<compile_context>
chip_gen: v6e
topology: v6e:2x2x1
jax: 0.10.0
libtpu: 0.0.40
codegen_flags: <defaults>
</compile_context>

<pallas_src>
import jax
import jax.numpy as jnp
from jax.experimental import pallas as pl
from jax.experimental.pallas import tpu as pltpu


def _path_kernel(x_ref, mask_ref, o_ref):
    # Single VPU broadcast-multiply; mask broadcasts over the batch dim (and
    # over lanes in the 3-D layout).  All perf levers live in the BlockSpecs.
    o_ref[...] = x_ref[...] * mask_ref[...]


def _vmem_plan():
    """Return (per_tile_budget_bytes, vmem_limit_bytes), generation aware."""
    try:
        cap = getattr(pltpu.get_tpu_info(), "vmem_capacity_bytes", None)
    except Exception:
        cap = None
    if cap is not None and cap >= 96 * 1024 * 1024:
        # v5e / v6e: 128 MiB physical VMEM -> larger slabs, raised scoped limit.
        return 12 * 1024 * 1024, 64 << 20
    # v7x (64 MiB physical) or unknown chip: stay within 32 MiB scoped.
    return 6 * 1024 * 1024, 32 << 20


def _floor128(n):
    return (n // 128) * 128


def path_layer_forward(x, unit_mapping, active_task, *, in_place=False):
    """x: (B, C, H, W); unit_mapping: (task_count, C); active_task: python int."""
    B, C, H, W = x.shape
    HW = H * W
    itemsize = x.dtype.itemsize
    budget, vmem_limit = _vmem_plan()

    # Static task id: select the mask row in the wrapper; cast once to x.dtype.
    mask_row = jnp.asarray(unit_mapping)[active_task].astype(x.dtype)  # (C,)

    compiler_params = pltpu.CompilerParams(
        dimension_semantics=("parallel", "parallel"),
        vmem_limit_bytes=vmem_limit,
    )
    extra = {"input_output_aliases": {0: 0}} if in_place else {}

    # ---------- small-C fast path: flatten channels into the lane axis ------
    row_bytes = C * HW * itemsize
    small_c = C * itemsize < 32  # channels do not fill a sublane group
    use_2d, bt2 = False, 0
    if small_c:
        if B * row_bytes <= budget:
            bt2, use_2d = B, True            # bt == full B satisfies (8,128) rule
        elif budget // row_bytes >= 8:
            bt2, use_2d = (budget // row_bytes) // 8 * 8, True  # multiple of 8

    if use_2d:
        L = C * HW
        x2 = x.reshape(B, L)
        # Pre-broadcast mask (1, C*HW): fetched once, resident across the grid.
        mask2 = jnp.broadcast_to(mask_row[:, None], (C, HW)).reshape(1, L)
        if bt2 == B and L % 128 == 0 and L >= 256:
            # Split the lane axis so the grid keeps >=2 parallel steps (v7x).
            l_tile = max(
                128,
                min(_floor128(L // 2),
                    _floor128(max(budget // (bt2 * itemsize), 128))),
            )
        else:
            l_tile = L
        grid = (pl.cdiv(B, bt2), pl.cdiv(L, l_tile))
        out = pl.pallas_call(
            _path_kernel,
            out_shape=jax.ShapeDtypeStruct((B, L), x.dtype),
            grid=grid,
            in_specs=[
                pl.BlockSpec((bt2, l_tile), lambda i, j: (i, j)),
                pl.BlockSpec((1, l_tile), lambda i, j: (0, j)),
            ],
            out_specs=pl.BlockSpec((bt2, l_tile), lambda i, j: (i, j)),
            compiler_params=compiler_params,
            cost_estimate=pl.CostEstimate(
                flops=B * L,
                transcendentals=0,
                bytes_accessed=2 * B * L * itemsize + L * itemsize,
            ),
            **extra,
        )(x2, mask2)
        return out.reshape(B, C, H, W)

    # ---------- general path: (bt, C, HW) contiguous batch slabs ------------
    x3 = x.reshape(B, C, HW)
    mask3 = mask_row.reshape(1, C, 1)
    slab = C * HW * itemsize  # bytes per sample
    if slab <= budget:
        bt = max(1, budget // slab)
        if B >= 2:
            bt = min(bt, -(-B // 2))  # keep >=2 batch blocks for megacore
        bt = min(bt, B)
        hw_tile = HW
    else:
        # One sample does not fit the budget: fall back to tiling HW.
        bt = 1
        hw_tile = min(HW, max(128, _floor128(budget // (C * itemsize))))
        # TODO(synk): if even a (1, C, 128) slab exceeds the budget (C in the
        # tens of thousands), add a third grid axis tiling C as well.

    grid = (pl.cdiv(B, bt), pl.cdiv(HW, hw_tile))
    out = pl.pallas_call(
        _path_kernel,
        out_shape=jax.ShapeDtypeStruct((B, C, HW), x.dtype),
        grid=grid,
        in_specs=[
            pl.BlockSpec((bt, C, hw_tile), lambda i, j: (i, 0, j)),
            pl.BlockSpec((1, C, 1), lambda i, j: (0, 0, 0)),
        ],
        out_specs=pl.BlockSpec((bt, C, hw_tile), lambda i, j: (i, 0, j)),
        compiler_params=compiler_params,
        cost_estimate=pl.CostEstimate(
            flops=B * C * HW,
            transcendentals=0,
            bytes_accessed=2 * B * C * HW * itemsize + C * itemsize,
        ),
        **extra,
    )(x3, mask3)
    return out.reshape(B, C, H, W)


if __name__ == "__main__":
    task_count = 3
    active_task = 1
    key = jax.random.PRNGKey(0)

    # --- case 1: small C (C=4) -> flattened (B, C*HW) fast path -------------
    B, C, H, W = 2, 4, 16, 16
    kx, km, key = jax.random.split(key, 3)
    x = jax.random.normal(kx, (B, C, H, W), dtype=jnp.float32)
    unit_mapping = jax.random.uniform(km, (task_count, C), dtype=jnp.float32)
    out = jax.block_until_ready(path_layer_forward(x, unit_mapping, active_task))
    ref = x * unit_mapping[active_task][None, :, None, None]
    assert out.shape == x.shape and out.dtype == x.dtype
    assert jnp.allclose(out, ref, atol=1e-6, rtol=1e-6)

    # --- case 2: larger C (C=16) -> (bt, C, HW) contiguous-slab path --------
    B2, C2, H2, W2 = 2, 16, 16, 16
    kx2, km2, key = jax.random.split(key, 3)
    x2 = jax.random.normal(kx2, (B2, C2, H2, W2), dtype=jnp.float32)
    unit_mapping2 = jax.random.uniform(km2, (task_count, C2), dtype=jnp.float32)
    out2 = jax.block_until_ready(path_layer_forward(x2, unit_mapping2, active_task))
    ref2 = x2 * unit_mapping2[active_task][None, :, None, None]
    assert out2.shape == x2.shape and out2.dtype == x2.dtype
    assert jnp.allclose(out2, ref2, atol=1e-6, rtol=1e-6)

    print("KERNEL_OK")
</pallas_src>

<mosaic_0001>
module attributes {stable_mosaic.version = 11 : i64} {
  func.func @_path_kernel(%arg0: i32, %arg1: i32, %arg2: memref<2x512xf32, #tpu.memory_space<vmem>>, %arg3: memref<1x512xf32, #tpu.memory_space<vmem>>, %arg4: memref<2x512xf32, #tpu.memory_space<vmem>>) attributes {dimension_semantics = [#tpu.dimension_semantics<parallel>, #tpu.dimension_semantics<parallel>], iteration_bounds = array<i64: 1, 2>, scalar_prefetch = 0 : i64, scratch_operands = 0 : i64, tpu.core_type = #tpu.core_type<tc>, window_params = [{transform_indices = @transform_0, window_bounds = array<i64: 2, 512>}, {transform_indices = @transform_1, window_bounds = array<i64: 1, 512>}, {transform_indices = @transform_2, window_bounds = array<i64: 2, 512>}]} {
    %c0 = arith.constant 0 : index
    %c0_0 = arith.constant 0 : index
    %0 = vector.load %arg2[%c0, %c0_0] : memref<2x512xf32, #tpu.memory_space<vmem>>, vector<2x512xf32>
    %c0_1 = arith.constant 0 : index
    %c0_2 = arith.constant 0 : index
    %1 = vector.load %arg3[%c0_1, %c0_2] : memref<1x512xf32, #tpu.memory_space<vmem>>, vector<1x512xf32>
    %2 = vector.broadcast %1 : vector<1x512xf32> to vector<2x512xf32>
    %3 = arith.mulf %0, %2 : vector<2x512xf32>
    %c0_3 = arith.constant 0 : index
    %c0_4 = arith.constant 0 : index
    %4 = vector.load %arg4[%c0_3, %c0_4] : memref<2x512xf32, #tpu.memory_space<vmem>>, vector<2x512xf32>
    tpu.vector_store %arg4[%c0_3, %c0_4], %3 {strides = array<i32>} : memref<2x512xf32, #tpu.memory_space<vmem>>, vector<2x512xf32>,
    return
  }
  func.func @transform_0(%arg0: i32, %arg1: i32) -> (i32, i32) {
    %c0_i32 = arith.constant 0 : i32
    return %arg0, %arg1 : i32, i32
  }
  func.func @transform_1(%arg0: i32, %arg1: i32) -> (i32, i32) {
    %c0_i32 = arith.constant 0 : i32
    %c0_i32_0 = arith.constant 0 : i32
    return %c0_i32, %arg1 : i32, i32
  }
  func.func @transform_2(%arg0: i32, %arg1: i32) -> (i32, i32) {
    %c0_i32 = arith.constant 0 : i32
    return %arg0, %arg1 : i32, i32
  }
}

</mosaic_0001>

<bundles_post_ra>
// kernel: tpu_custom_call.1
= control target key start
LH: loop header
LB: loop body
LE: loop exit
PB: predicated region body
PF: predicated region fallthrough
CT: control target
= control target key end

     0   :  { %7 = vsyncpa [#allocation3], 0  ;;  %s801_s0 = inlined_call_operand.hbm [shape: f32[2,1024], index: 0, kind: input, shape index: {}]   ;;  %s802_s1 = inlined_call_operand.hbm [shape: f32[1,1024], index: 1, kind: input, shape index: {}]   ;;  %s803_s2 = inlined_call_operand.hbm [shape: f32[2,1024], index: 2, kind: output, shape index: {}]  }
   0x1   :  { %9 = vsyncpa [#allocation3 + $0x1], 0 }
   0x2   :  { %10 = vsyncpa [#allocation6], 0 }
   0x3   :  { %12 = vsyncpa [#allocation6 + $0x1], 0 }
   0x4   :  { %13 = vsyncpa [#allocation4], 0 }
   0x5   :  { %15 = vsyncpa [#allocation4 + $0x1], 0  ;;  %s633_s9 = smov 0   ;;  %s635_s10 = smov 0  }
   0x6   :  { %s637_s11 = smov 0   ;;  %s639_s12 = smov 0  }
   0x7   :  { %s641_s13 = smov 0   ;;  %s643_s14 = smov 0  }
   0x8 LB: > { %s382_s15 = sadd.s32 4294967295, %s612_s14   ;;  %s383_s16 = sadd.s32 4294967294, %s612_s14   ;;  %s612_s14 = sphi %s643_s14, %s21_s14   ;;  %s608_s13 = sphi %s641_s13, %s815_s13   ;;  %s604_s12 = sphi %s639_s12, %s814_s12   ;;  %s600_s11 = sphi %s637_s11, %s813_s11   ;;  %s596_s10 = sphi %s635_s10, %s812_s10   ;;  %s592_s9 = sphi %s633_s9, %s811_s9  }
   0x9   : > { %s30_s17 = sadd.s32 1, %s608_s13  ;;  %s42_s18 = sadd.s32 1, %s600_s11 }
   0xa   : > { %p31_p0 = scmp.ge.s32.totalorder %s30_s17, 2  ;;  %p49_p1 = scmp.ne.s32.totalorder %s600_s11, %s596_s10 }
   0xb   : > { %p50_p2 = scmp.eq.s32.totalorder %s612_s14, 0  ;;  %p55_p3 = scmp.ne.s32.totalorder %s596_s10, %s592_s9 }
   0xc   : > { %s817_s17 = smov (%p31_p0, %s30_s17), 0  ;;  %p56_p5 = scmp.eq.s32.totalorder %s382_s15, 0 }
   0xd   : > { %p674_p4 = por %p50_p2, %p49_p1  ;;  %s38_s20 = ssub.s32 %s608_s13, %s817_s17 }
   0xe   : > { %p107_p6 = scmp.eq.s32.totalorder %s382_s15, 1  ;;  %p40_p7 = scmp.eq.s32.totalorder %s38_s20, 0 }
   0xf   : > { %p680_p8 = por %p56_p5, %p55_p3  ;;  %p113_p10 = scmp.eq.s32.totalorder %s383_s16, 1 }
  0x10   : > { %p684_p9 = por %p107_p6, %p49_p1  ;;  %p421_p13 = scmp.lt.s32.totalorder %s612_s14, 2 }
  0x11   : > { %s689_s23 = scalar_select %p40_p7, %s600_s11, %s42_s18  }
  0x12   : > { %p691_p11 = por %p113_p10, %p55_p3  ;;  %s698_s25 = sand.u32 1, %s600_s11  }
  0x13   : > { %s386_s26 = sshll.u32 %s698_s25, 3  ;;  %s401_s27 = sshll.u32 %s608_s13, 7 }
  0x14   : > { %s145_s30 = scalar_lea.hbm %s801_s0, %s401_s27  ;;  %s137_s3 = scalar_lea.vmem [#allocation2], %s386_s26 }
  0x15   : > { %s147_s4 = sshll.u32 %s137_s3, 4  ;;  %p707_p0 = pnand %p421_p13, %p674_p4  ;;  %s148_s4 = int_to_ptr.vmem [resolvable:$true] %s147_s4 }
  0x16   : > { %p392_p1 = scmp.ge.s32.totalorder %s612_s14, 1  ;;  %p171_p2 = scmp.lt.s32.totalorder %s612_s14, 3 }
  0x17   : > { %s134_s6 = scalar_lea.sflag [#allocation3], %s698_s25  ;;  %p474_p3 = pneg %p707_p0 }
  0x18   : > { %s485_s7 = scalar_lea.vmem %s148_s4, 128  ;;  %s614_s8 = smov [#allocation2]  }
  0x19   : > { %p486_p5 = scmp.ne.s32.totalorder %s148_s4, %s485_s7  ;;  %s490_s15 = sshll.u32 %s614_s8, 4  ;;  %s491_s15 = int_to_ptr.vmem [resolvable:$false] %s490_s15 }
  0x1a   : > { %s492_s16 = scalar_lea.vmem %s491_s15, 256  ;;  %p493_p4 = scmp.lt.s32.totalorder %s148_s4, %s491_s15 }
  0x1b   : > { %p488_p6 = pnand %p486_p5, %p474_p3  ;;  %p494_p10 = scmp.lt.s32.totalorder %s492_s16, %s485_s7 }
  0x1d   : > { %p489_p7 = pneg %p488_p6  ;;  %p495_p13 = por %p494_p10, %p493_p4 }
  0x1f   : > { %p496_p12 = pnand %p495_p13, %p489_p7 }
  0x21   : > { %499 = shalt.err (!%p496_p12)
}
  0x22   : > { %413 = dma.hbm_to_vmem [thread:$0]  (!%p707_p0), %s145_s30, 128, %s148_s4, %s134_s6  }
  0x23   : > { %p725_p5 = pnand %p392_p1, %p171_p2  ;;  %s389_s19 = sshll.u32 %s698_s25, 2 }
  0x24   : > { %s402_s20 = sshll.u32 %s608_s13, 6  ;;  %s158_s29 = scalar_lea.vmem [#allocation5], %s389_s19 }
  0x25   : > { %s164_s28 = scalar_lea.hbm %s802_s1, %s402_s20  ;;  %s166_s3 = sshll.u32 %s158_s29, 4  ;;  %s167_s3 = int_to_ptr.vmem [resolvable:$true] %s166_s3 }
  0x26   : > { %s155_s7 = scalar_lea.sflag [#allocation6], %s698_s25  ;;  %s513_s8 = scalar_lea.vmem %s167_s3, 64 }
  0x27   : > { %p514_p12 = scmp.ne.s32.totalorder %s167_s3, %s513_s8  ;;  %s615_s30 = smov [#allocation5]  }
  0x28   : > { %s518_s4 = sshll.u32 %s615_s30, 4  ;;  %s519_s4 = int_to_ptr.vmem [resolvable:$false] %s518_s4 }
  0x29   : > { %p516_p6 = pnand %p514_p12, %p474_p3  ;;  %s520_s6 = scalar_lea.vmem %s519_s4, 128 }
  0x2a   : > { %p521_p1 = scmp.lt.s32.totalorder %s167_s3, %s519_s4  ;;  %p522_p2 = scmp.lt.s32.totalorder %s520_s6, %s513_s8 }
  0x2b   : > { %p517_p7 = pneg %p516_p6 }
  0x2c   : > { %p523_p4 = por %p522_p2, %p521_p1 }
  0x2e   : > { %p524_p10 = pnand %p523_p4, %p517_p7 }
  0x30   : > { %527 = shalt.err (!%p524_p10)
}
  0x31   : > { %416 = dma.hbm_to_vmem [thread:$0]  (!%p707_p0), %s164_s28, 64, %s167_s3, %s155_s7  }
  0x32   : > { %175 = sbr.rel (%p725_p5) target bundleno = 88 (0x58), region = 28  ;;  %s743_s25 = sand.u32 (!%p725_p5), 1, %s596_s10  }
  0x33   : > { %s393_s15 = sshll.u32 (!%p725_p5), %s743_s25, 3  ;;  %s178_s16 = scalar_lea.sflag (!%p725_p5), [#allocation3], %s743_s25 }
  0x34   : > { %s181_s19 = scalar_lea.vmem (!%p725_p5), [#allocation2], %s393_s15 }
  0x37   : > { %579 = dma.done.wait (%p680_p8), %s178_s16, 128  }
  0x38   : > { %581 = vsyncadd (%p680_p8), %s178_s16, 4294967168  ;;  %s394_s5 = sshll.u32 %s743_s25, 2  ;;  %s187_s18 = scalar_lea.sflag [#allocation6], %s743_s25 }
  0x39   : > { %s190_s20 = scalar_lea.vmem [#allocation5], %s394_s5 }
  0x3a   : > { %583 = dma.done.wait (%p680_p8), %s187_s18, 64  }
  0x3b   : > { %585 = vsyncadd (%p680_p8), %s187_s18, 4294967232  ;;  %v222_v0 = vlaneseq  ;;  %v616_v1 = vmov 1983009808   ;;  %v220_v9 = vld [vmem:[%s190_s20] sm:$0xf]  ;;  %v219_v19 = vld [vmem:[%s181_s19] sm:$0xff] }
  0x3c   : > { %v241_v2 = vunpack.c.l.s4 %v616_v1  ;;  %s215_s21 = scalar_lea.vmem [#allocation7], %s393_s15  ;;  %s403_s27 = sshll.u32 %s604_s12, 7 }
  0x3d   : > { %v223_v3 = vshrl.u32 %v222_v0, 7  ;;  %s275_s26 = sshll.u32 %s215_s21, 4  ;;  %s273_s3 = scalar_lea.hbm %s803_s2, %s403_s27  ;;  %s276_s26 = int_to_ptr.vmem [resolvable:$true] %s275_s26 }
  0x3e   : > { %v242_v4 = vunpack.c.0.s8 %v241_v2  ;;  %s259_s7 = scalar_lea.sflag [#allocation4], %s743_s25  ;;  %s528_s8 = scalar_lea.vmem %s276_s26, 128 }
  0x3f   : > { %v224_v5 = vsub.s32 0, %v223_v3  ;;  %v228_v6 = vsub.s32 1, %v223_v3  ;;  %v232_v7 = vsub.s32 2, %v223_v3  ;;  %v236_v8 = vsub.s32 3, %v223_v3  ;;  %p529_p8 = scmp.ne.s32.totalorder %s276_s26, %s528_s8  ;;  %s617_s30 = smov [#allocation7]  }
  0x40   : > { %v245_v10 = vsub.s32 %v242_v4, %v223_v3  ;;  %s532_s4 = sshll.u32 %s617_s30, 4  ;;  %s533_s4 = int_to_ptr.vmem [resolvable:$false] %s532_s4 }
  0x41   : > { %v225_v11 = vrot.slane %v220_v9, %v224_v5  ;;  %v229_v12 = vrot.slane %v220_v9, %v228_v6  ;;  %v233_v13 = vrot.slane %v220_v9, %v232_v7  ;;  %v237_v14 = vrot.slane %v220_v9, %v236_v8  ;;  %p530_p0 = pnand %p529_p8, %p684_p9  ;;  %s534_s6 = scalar_lea.vmem %s533_s4, 256 }
  0x42   : > { %p535_p13 = scmp.lt.s32.totalorder %s276_s26, %s533_s4  ;;  %p536_p5 = scmp.lt.s32.totalorder %s534_s6, %s528_s8 }
  0x43   : > { %v238_v15 = vcombine.low %v225_v11, %v229_v12  ;;  %v239_v16 = vcombine.low %v233_v13, %v237_v14  ;;  %p531_p3 = pneg %p530_p0 }
  0x44   : > { %p537_p12 = por %p536_p5, %p535_p13 }
  0x45   : > { %v246_v17 = vrot.slane %v238_v15, %v245_v10  ;;  %v253_v18 = vrot.slane %v239_v16, %v245_v10 }
  0x46   : > { %p538_p6 = pnand %p537_p12, %p531_p3 }
  0x47   : > { %v254_v20 = vcombine.low %v246_v17, %v253_v18 }
  0x49   : > { %v256_v21 = vmul.f32 %v254_v20, %v219_v19 }
  0x4b   : > { %257 = vst [vmem:[%s215_s21] sm:$0xff] %v256_v21 }
  0x4c   : > { %541 = shalt.err (!%p538_p6)
}
  0x4d   : > { %s542_s12 = scalar_lea.hbm %s273_s3, 128  ;;  %s546_s16 = scalar_lea.hbm %s803_s2, 256 }
  0x4e   : > { %p543_p7 = scmp.ne.s32.totalorder %s273_s3, %s542_s12  ;;  %p547_p4 = scmp.lt.s32.totalorder %s273_s3, %s803_s2 }
  0x4f   : > { %p548_p10 = scmp.lt.s32.totalorder %s546_s16, %s542_s12 }
  0x50   : > { %p544_p1 = pnand %p543_p7, %p684_p9 }
  0x51   : > { %p549_p8 = por %p548_p10, %p547_p4 }
  0x52   : > { %p545_p2 = pneg %p544_p1 }
  0x54   : > { %p550_p0 = pnand %p549_p8, %p545_p2 }
  0x56   : > { %553 = shalt.err (!%p550_p0)
}
  0x57   : > { %408 = dma.vmem_to_hbm [thread:$0]  (%p684_p9), %s276_s26, 128, %s273_s3, %s259_s7  }
  0x58 PF: > { %s287_s18 = sand.u32 1, %s592_s9   ;;  %p810_p3 = scmp.ge.s32.totalorder %s612_s14, 2 }
  0x59   : > { %s288_s20 = scalar_lea.sflag [#allocation4], %s287_s18 }
  0x5a   : > { %p418_p13 = pnand %p810_p3, %p691_p11 }
  0x5c   : > { %p419_p5 = pneg %p418_p13 }
  0x5e   : > { %587 = dma.done.wait (%p419_p5), %s288_s20, 128  }
  0x5f   : > { %589 = vsyncadd (%p419_p5), %s288_s20, 4294967168  ;;  %s21_s14 = sadd.s32 1, %s612_s14   ;;  %s811_s9 = smov %s596_s10 }
  0x60   : > { %p18_p12 = scmp.ge.s32.totalorder %s21_s14, 4   ;;  %s812_s10 = smov %s600_s11 }
  0x61   : > { %s813_s11 = smov %s689_s23  ;;  %s814_s12 = smov %s608_s13 }
  0x62   : > { %s815_s13 = smov %s817_s17  ;;  %20 = sbr.rel (!%p18_p12) target bundleno = 8 (0x8), region = 86 }
  0x67   :  { %293 = vsyncpa [#allocation3], 1 }
  0x68   :  { %295 = vsyncpa [#allocation3 + $0x1], 1 }
  0x69   :  { %296 = vsyncpa [#allocation6], 1 }
  0x6a   :  { %298 = vsyncpa [#allocation6 + $0x1], 1 }
  0x6b   :  { %299 = vsyncpa [#allocation4], 1 }
  0x6c   :  { %301 = vsyncpa [#allocation4 + $0x1], 1 }

</bundles_post_ra>
